<compile_context>
chip_gen: v5e
topology: v5e:2x2
jax: 0.10.0
libtpu: 0.0.40
codegen_flags: <defaults>
</compile_context>

<pallas_src>
import functools
import math

import jax
import jax.numpy as jnp
from jax.experimental import pallas as pl
from jax.experimental.pallas import tpu as pltpu


def _round_up(a, b):
    return ((a + b - 1) // b) * b


_COMPILER_PARAMS = pltpu.CompilerParams(
    dimension_semantics=("parallel", "arbitrary"),
    # 48 MiB: under v7x's 64 MiB physical VMEM, well within v5e/v6e's 128 MiB,
    # and enough for the resident support/weight slabs + double-buffered adj tiles.
    vmem_limit_bytes=48 * 1024 * 1024,
)


# ----------------------------- kernel bodies -----------------------------

def _mm_kernel(a_ref, w_ref, o_ref, acc_ref, *, tk):
    """o = a @ w.  Grid: (row tile i, K tile k).  w is fully VMEM-resident; the
    k-th K-slab is sliced in-kernel.  f32 accumulation in scratch."""
    k = pl.program_id(1)

    @pl.when(k == 0)
    def _init():
        acc_ref[...] = jnp.zeros_like(acc_ref)

    off = pl.multiple_of(k * tk, tk)
    acc_ref[...] += jnp.dot(a_ref[...], w_ref[pl.ds(off, tk), :],
                            preferred_element_type=jnp.float32)

    @pl.when(k == pl.num_programs(1) - 1)
    def _finalize():
        o_ref[...] = acc_ref[...].astype(o_ref.dtype)


def _adj_mm_bias_relu_kernel(adj_ref, s_ref, b_ref, o_ref, acc_ref, *, tk):
    """o = relu(adj @ s + b).  adj streamed in (tm, tk) tiles; s resident."""
    k = pl.program_id(1)

    @pl.when(k == 0)
    def _init():
        acc_ref[...] = jnp.zeros_like(acc_ref)

    off = pl.multiple_of(k * tk, tk)
    acc_ref[...] += jnp.dot(adj_ref[...], s_ref[pl.ds(off, tk), :],
                            preferred_element_type=jnp.float32)

    @pl.when(k == pl.num_programs(1) - 1)
    def _finalize():
        h = acc_ref[...] + b_ref[...]          # bias resident, f32
        o_ref[...] = jnp.maximum(h, 0.0).astype(o_ref.dtype)


def _adj_mm_bias_logsoftmax_kernel(adj_ref, s_ref, b_ref, o_ref, *, tk, nclass):
    """o = log_softmax(adj @ s + b, axis=1) over the first `nclass` (valid) lanes.
    Accumulates directly into the resident f32 output block (no scratch)."""
    k = pl.program_id(1)

    @pl.when(k == 0)
    def _init():
        o_ref[...] = jnp.zeros_like(o_ref)

    off = pl.multiple_of(k * tk, tk)
    o_ref[...] += jnp.dot(adj_ref[...], s_ref[pl.ds(off, tk), :],
                          preferred_element_type=jnp.float32)

    @pl.when(k == pl.num_programs(1) - 1)
    def _finalize():
        z = o_ref[...] + b_ref[...]
        col = jax.lax.broadcasted_iota(jnp.int32, z.shape, 1)
        valid = col < nclass
        zm = jnp.where(valid, z, -jnp.inf)
        m = jnp.max(zm, axis=1, keepdims=True)
        e = jnp.exp(jnp.where(valid, z - m, -jnp.inf))
        lse = jnp.log(jnp.sum(e, axis=1, keepdims=True))
        o_ref[...] = (z - m) - lse             # padded lanes hold garbage; sliced off


# ----------------------------- pallas_call wrappers -----------------------------

def _tiled_matmul(a, w, *, out_dtype, tm, tk):
    """C = A @ W with A:(M,K) streamed, W:(K,N) resident; M % tm == 0, K % tk == 0."""
    M, K = a.shape
    K2, N = w.shape
    assert K == K2 and M % tm == 0 and K % tk == 0
    cost = pl.CostEstimate(
        flops=int(2 * M * K * N),
        transcendentals=0,
        bytes_accessed=int(a.size * a.dtype.itemsize + w.size * w.dtype.itemsize
                           + M * N * jnp.dtype(out_dtype).itemsize),
    )
    return pl.pallas_call(
        functools.partial(_mm_kernel, tk=tk),
        out_shape=jax.ShapeDtypeStruct((M, N), out_dtype),
        grid_spec=pltpu.PrefetchScalarGridSpec(
            num_scalar_prefetch=0,
            grid=(M // tm, K // tk),
            in_specs=[
                pl.BlockSpec((tm, tk), lambda i, k: (i, k)),   # A: streamed tiles
                pl.BlockSpec((K, N), lambda i, k: (0, 0)),     # W: resident, DMA'd once
            ],
            out_specs=pl.BlockSpec((tm, N), lambda i, k: (i, 0)),
            scratch_shapes=[pltpu.VMEM((tm, N), jnp.float32)],
        ),
        compiler_params=_COMPILER_PARAMS,
        cost_estimate=cost,
    )(a, w)


def _adj_matmul_bias_relu(adj, s, bias, *, out_dtype, tm, tk):
    """out = relu(adj @ s + bias); adj:(M,K) streamed, s:(K,N) resident, bias:(1,N)."""
    M, K = adj.shape
    K2, N = s.shape
    assert K == K2 and M % tm == 0 and K % tk == 0 and bias.shape == (1, N)
    cost = pl.CostEstimate(
        flops=int(2 * M * K * N),
        transcendentals=0,
        bytes_accessed=int(adj.size * adj.dtype.itemsize + s.size * s.dtype.itemsize
                           + bias.size * bias.dtype.itemsize
                           + M * N * jnp.dtype(out_dtype).itemsize),
    )
    return pl.pallas_call(
        functools.partial(_adj_mm_bias_relu_kernel, tk=tk),
        out_shape=jax.ShapeDtypeStruct((M, N), out_dtype),
        grid_spec=pltpu.PrefetchScalarGridSpec(
            num_scalar_prefetch=0,
            grid=(M // tm, K // tk),
            in_specs=[
                pl.BlockSpec((tm, tk), lambda i, k: (i, k)),   # adj tile
                pl.BlockSpec((K, N), lambda i, k: (0, 0)),     # support: resident
                pl.BlockSpec((1, N), lambda i, k: (0, 0)),     # bias: resident
            ],
            out_specs=pl.BlockSpec((tm, N), lambda i, k: (i, 0)),
            scratch_shapes=[pltpu.VMEM((tm, N), jnp.float32)],
        ),
        compiler_params=_COMPILER_PARAMS,
        cost_estimate=cost,
    )(adj, s, bias)


def _adj_matmul_bias_logsoftmax(adj, s, bias, *, nclass, tm, tk):
    """out = log_softmax(adj @ s + bias) (f32); accumulates into the output block."""
    M, K = adj.shape
    K2, N = s.shape
    assert K == K2 and M % tm == 0 and K % tk == 0 and bias.shape == (1, N)
    cost = pl.CostEstimate(
        flops=int(2 * M * K * N),
        transcendentals=int(M * N + M),       # exp over the block + log per row
        bytes_accessed=int(adj.size * adj.dtype.itemsize + s.size * s.dtype.itemsize
                           + bias.size * bias.dtype.itemsize + M * N * 4),
    )
    return pl.pallas_call(
        functools.partial(_adj_mm_bias_logsoftmax_kernel, tk=tk, nclass=nclass),
        out_shape=jax.ShapeDtypeStruct((M, N), jnp.float32),
        grid_spec=pltpu.PrefetchScalarGridSpec(
            num_scalar_prefetch=0,
            grid=(M // tm, K // tk),
            in_specs=[
                pl.BlockSpec((tm, tk), lambda i, k: (i, k)),   # adj tile
                pl.BlockSpec((K, N), lambda i, k: (0, 0)),     # support: resident
                pl.BlockSpec((1, N), lambda i, k: (0, 0)),     # bias: resident
            ],
            out_specs=pl.BlockSpec((tm, N), lambda i, k: (i, 0)),  # f32 accumulator
        ),
        compiler_params=_COMPILER_PARAMS,
        cost_estimate=cost,
    )(adj, s, bias)


# ----------------------------- GCN forward -----------------------------

def _choose_row_tile(Np, max_tile):
    """Largest 128-multiple <= max_tile dividing Np, preferring an even tile count
    (so v7x's two TensorCores both get work on the parallel axis)."""
    cands = [t for t in range(min(max_tile, Np), 127, -128) if Np % t == 0]
    if not cands:
        return 128
    even = [t for t in cands if (Np // t) % 2 == 0]
    return even[0] if even else cands[0]


def gcn_prepare_adj(adj, *, max_node_tile=512, compute_dtype=jnp.bfloat16):
    """Pad + cast the adjacency ONCE (it is static across a GCN run).
    Hoisted out of the jitted per-step forward to avoid a per-forward O(N^2) HBM pass."""
    N = adj.shape[0]
    assert adj.shape == (N, N)
    Np = _round_up(N, 128)
    tile_n = _choose_row_tile(Np, max_node_tile)
    adj_p = jnp.pad(adj, ((0, Np - N), (0, Np - N))).astype(compute_dtype)
    return adj_p, tile_n


def gcn_forward(x, adj_p, w1, b1, w2, b2, *, tile_n, max_k_tile=512,
                compute_dtype=jnp.bfloat16):
    """log_softmax(adj @ relu(adj @ (x @ W1) + b1) @ W2 + b2, axis=1), eval mode.

    `adj_p` is the pre-padded / pre-cast adjacency from gcn_prepare_adj; `tile_n`
    must be the row tile returned alongside it (static under jit)."""
    N, nfeat = x.shape
    Np = adj_p.shape[0]
    nhid = w1.shape[1]
    nclass = w2.shape[1]
    assert adj_p.shape == (Np, Np) and Np >= N and Np % tile_n == 0

    def _ktile(d):
        if d <= max_k_tile:
            dp = _round_up(d, 128)
            return dp, dp                                # single K step
        dp = _round_up(d, max_k_tile)
        return dp, max_k_tile

    nfeat_p, tkf = _ktile(nfeat)
    nhid_p, tkh = _ktile(nhid)
    nclass_p = _round_up(nclass, 128)                    # lane-dense output

    def pad_to(arr, shape):
        return jnp.pad(arr, [(0, s - d) for d, s in zip(arr.shape, shape)])

    # bf16 matmul operands, f32 biases (zero-padding keeps the math exact).
    x_p = pad_to(x, (Np, nfeat_p)).astype(compute_dtype)
    w1_p = pad_to(w1, (nfeat_p, nhid_p)).astype(compute_dtype)
    w2_p = pad_to(w2, (nhid_p, nclass_p)).astype(compute_dtype)
    b1_p = pad_to(b1.reshape(1, nhid), (1, nhid_p)).astype(jnp.float32)
    b2_p = pad_to(b2.reshape(1, nclass), (1, nclass_p)).astype(jnp.float32)

    # ---- layer 1: support1 = x @ W1 ; h = relu(adj @ support1 + b1) ----
    s1 = _tiled_matmul(x_p, w1_p, out_dtype=compute_dtype, tm=tile_n, tk=tkf)
    h = _adj_matmul_bias_relu(adj_p, s1, b1_p, out_dtype=compute_dtype,
                              tm=tile_n, tk=tile_n)

    # TODO(synk): training-mode dropout (pltpu.prng_* + mask) not applied; eval semantics only.

    # ---- layer 2: support2 = h @ W2 ; z = adj @ support2 + b2 ; log_softmax ----
    s2 = _tiled_matmul(h, w2_p, out_dtype=compute_dtype, tm=tile_n, tk=tkh)
    out_p = _adj_matmul_bias_logsoftmax(adj_p, s2, b2_p, nclass=nclass,
                                        tm=tile_n, tk=tile_n)

    return out_p[:N, :nclass]


def init_gc_params(key, in_size, out_size):
    """Mimics GraphConvolution.reset_parameters: uniform(-stdv, stdv), stdv=1/sqrt(out)."""
    stdv = 1.0 / math.sqrt(out_size)
    kw, kb = jax.random.split(key)
    w = jax.random.uniform(kw, (in_size, out_size), jnp.float32, -stdv, stdv)
    b = jax.random.uniform(kb, (out_size,), jnp.float32, -stdv, stdv)
    return w, b


if __name__ == "__main__":
    # Small shapes consistent with the module: N nodes, nfeat -> nhid -> nclass
    N, nfeat, nhid, nclass = 16, 32, 32, 8

    key = jax.random.PRNGKey(0)
    kx, kadj, k1, k2 = jax.random.split(key, 4)

    # Node features
    x = jax.random.normal(kx, (N, nfeat), jnp.float32)

    # Deterministic symmetric normalized adjacency: A_hat = D^-1/2 (A + I) D^-1/2
    a = (jax.random.uniform(kadj, (N, N)) < 0.3).astype(jnp.float32)
    a = jnp.maximum(a, a.T)
    a = a + jnp.eye(N, dtype=jnp.float32)
    d_inv_sqrt = 1.0 / jnp.sqrt(jnp.sum(a, axis=1))
    adj = a * d_inv_sqrt[:, None] * d_inv_sqrt[None, :]

    # Parameters (deterministic init matching reset_parameters)
    w1, b1 = init_gc_params(k1, nfeat, nhid)
    w2, b2 = init_gc_params(k2, nhid, nclass)

    # Hoisted, one-time adjacency pad + cast (static across a run).
    adj_p, tile_n = gcn_prepare_adj(adj)
    adj_p = jax.block_until_ready(adj_p)

    fwd = jax.jit(functools.partial(gcn_forward, tile_n=tile_n))
    out = fwd(x, adj_p, w1, b1, w2, b2)
    jax.block_until_ready(out)
    assert out.shape == (N, nclass)

    # Reference 1: mirror the kernel's bf16-operand / f32-accumulate math.
    bf = jnp.bfloat16
    xb, adjb, w1b, w2b = (t.astype(bf) for t in (x, adj, w1, w2))
    s1_r = jnp.dot(xb, w1b, preferred_element_type=jnp.float32).astype(bf)
    h_r = jnp.maximum(jnp.dot(adjb, s1_r, preferred_element_type=jnp.float32) + b1,
                      0.0).astype(bf)
    s2_r = jnp.dot(h_r, w2b, preferred_element_type=jnp.float32).astype(bf)
    z_r = jnp.dot(adjb, s2_r, preferred_element_type=jnp.float32) + b2
    ref_bf16 = jax.nn.log_softmax(z_r, axis=1)
    assert jnp.allclose(out, ref_bf16, atol=1e-2, rtol=1e-2), "mismatch vs bf16 reference"

    # Reference 2: pure f32 semantics of the torch module (eval mode), looser tolerance
    # because matmul operands are bf16 in the kernel.
    h32 = jnp.maximum(adj @ (x @ w1) + b1, 0.0)
    z32 = adj @ (h32 @ w2) + b2
    ref_f32 = jax.nn.log_softmax(z32, axis=1)
    assert jnp.allclose(out, ref_f32, atol=5e-2, rtol=5e-2), "mismatch vs f32 reference"

    print("KERNEL_OK")
</pallas_src>

<mosaic_0001>
module attributes {stable_mosaic.version = 11 : i64} {
  func.func @_mm_kernel(%arg0: i32, %arg1: i32, %arg2: memref<128x128xbf16, #tpu.memory_space<vmem>>, %arg3: memref<128x128xbf16, #tpu.memory_space<vmem>>, %arg4: memref<128x128xbf16, #tpu.memory_space<vmem>>, %arg5: memref<128x128xf32, #tpu.memory_space<vmem>>) attributes {dimension_semantics = [#tpu.dimension_semantics<parallel>, #tpu.dimension_semantics<arbitrary>], iteration_bounds = array<i64: 1, 1>, scalar_prefetch = 0 : i64, scratch_operands = 1 : i64, tpu.core_type = #tpu.core_type<tc>, window_params = [{transform_indices = @transform_0, window_bounds = array<i64: 128, 128>}, {pipeline_mode = #tpu.pipeline_mode<synchronous>, transform_indices = @transform_1, window_bounds = array<i64: 128, 128>}, {transform_indices = @transform_2, window_bounds = array<i64: 128, 128>}]} {
    %c0_i32 = arith.constant 0 : i32
    %0 = arith.cmpi eq, %arg1, %c0_i32 : i32
    %1 = arith.extui %0 : i1 to i32
    %c0_i32_0 = arith.constant 0 : i32
    %2 = arith.cmpi ne, %1, %c0_i32_0 : i32
    scf.if %2 {
      %cst_9 = arith.constant 0.000000e+00 : f32
      %15 = vector.broadcast %cst_9 : f32 to vector<128x128xf32>
      %c0_10 = arith.constant 0 : index
      %c0_11 = arith.constant 0 : index
      %16 = vector.load %arg5[%c0_10, %c0_11] : memref<128x128xf32, #tpu.memory_space<vmem>>, vector<128x128xf32>
      tpu.vector_store %arg5[%c0_10, %c0_11], %15 {strides = array<i32>} : memref<128x128xf32, #tpu.memory_space<vmem>>, vector<128x128xf32>,
    } else {
    }
    %c128_i32 = arith.constant 128 : i32
    %3 = arith.muli %arg1, %c128_i32 : i32
    %4 = tpu.assume_multiple %3, 128 : i32
    %c0 = arith.constant 0 : index
    %c0_1 = arith.constant 0 : index
    %5 = vector.load %arg5[%c0, %c0_1] : memref<128x128xf32, #tpu.memory_space<vmem>>, vector<128x128xf32>
    %c0_2 = arith.constant 0 : index
    %c0_3 = arith.constant 0 : index
    %6 = vector.load %arg2[%c0_2, %c0_3] : memref<128x128xbf16, #tpu.memory_space<vmem>>, vector<128x128xbf16>
    %7 = arith.index_cast %4 : i32 to index
    %c0_4 = arith.constant 0 : index
    %8 = vector.load %arg3[%7, %c0_4] : memref<128x128xbf16, #tpu.memory_space<vmem>>, vector<128x128xbf16>
    %cst = arith.constant dense<0.000000e+00> : vector<128x128xf32>
    %9 = tpu.matmul %6, %8, %cst {dimension_numbers = #tpu.dot_dimension_numbers<[1], [0], [0], [1], [0, 0, 1, 1], [], []>} : vector<128x128xbf16>, vector<128x128xbf16>, vector<128x128xf32> -> vector<128x128xf32>
    %10 = arith.addf %5, %9 : vector<128x128xf32>
    %c0_5 = arith.constant 0 : index
    %c0_6 = arith.constant 0 : index
    %11 = vector.load %arg5[%c0_5, %c0_6] : memref<128x128xf32, #tpu.memory_space<vmem>>, vector<128x128xf32>
    tpu.vector_store %arg5[%c0_5, %c0_6], %10 {strides = array<i32>} : memref<128x128xf32, #tpu.memory_space<vmem>>, vector<128x128xf32>,
    %c0_i32_7 = arith.constant 0 : i32
    %12 = arith.cmpi eq, %arg1, %c0_i32_7 : i32
    %13 = arith.extui %12 : i1 to i32
    %c0_i32_8 = arith.constant 0 : i32
    %14 = arith.cmpi ne, %13, %c0_i32_8 : i32
    scf.if %14 {
      %c0_9 = arith.constant 0 : index
      %c0_10 = arith.constant 0 : index
      %15 = vector.load %arg5[%c0_9, %c0_10] : memref<128x128xf32, #tpu.memory_space<vmem>>, vector<128x128xf32>
      %16 = arith.truncf %15 : vector<128x128xf32> to vector<128x128xbf16>
      %c0_11 = arith.constant 0 : index
      %c0_12 = arith.constant 0 : index
      %17 = vector.load %arg4[%c0_11, %c0_12] : memref<128x128xbf16, #tpu.memory_space<vmem>>, vector<128x128xbf16>
      tpu.vector_store %arg4[%c0_11, %c0_12], %16 {strides = array<i32>} : memref<128x128xbf16, #tpu.memory_space<vmem>>, vector<128x128xbf16>,
    } else {
    }
    return
  }
  func.func @transform_0(%arg0: i32, %arg1: i32) -> (i32, i32) {
    %c0_i32 = arith.constant 0 : i32
    return %arg0, %arg1 : i32, i32
  }
  func.func @transform_1(%arg0: i32, %arg1: i32) -> (i32, i32) {
    %c0_i32 = arith.constant 0 : i32
    %c0_i32_0 = arith.constant 0 : i32
    %c0_i32_1 = arith.constant 0 : i32
    return %c0_i32, %c0_i32_0 : i32, i32
  }
  func.func @transform_2(%arg0: i32, %arg1: i32) -> (i32, i32) {
    %c0_i32 = arith.constant 0 : i32
    %c0_i32_0 = arith.constant 0 : i32
    return %arg0, %c0_i32 : i32, i32
  }
}

module attributes {stable_mosaic.version = 11 : i64} {
  func.func @_adj_mm_bias_relu_kernel(%arg0: i32, %arg1: i32, %arg2: memref<128x128xbf16, #tpu.memory_space<vmem>>, %arg3: memref<128x128xbf16, #tpu.memory_space<vmem>>, %arg4: memref<1x128xf32, #tpu.memory_space<vmem>>, %arg5: memref<128x128xbf16, #tpu.memory_space<vmem>>, %arg6: memref<128x128xf32, #tpu.memory_space<vmem>>) attributes {dimension_semantics = [#tpu.dimension_semantics<parallel>, #tpu.dimension_semantics<arbitrary>], iteration_bounds = array<i64: 1, 1>, scalar_prefetch = 0 : i64, scratch_operands = 1 : i64, tpu.core_type = #tpu.core_type<tc>, window_params = [{transform_indices = @transform_0, window_bounds = array<i64: 128, 128>}, {pipeline_mode = #tpu.pipeline_mode<synchronous>, transform_indices = @transform_1, window_bounds = array<i64: 128, 128>}, {pipeline_mode = #tpu.pipeline_mode<synchronous>, transform_indices = @transform_2, window_bounds = array<i64: 1, 128>}, {transform_indices = @transform_3, window_bounds = array<i64: 128, 128>}]} {
    %c0_i32 = arith.constant 0 : i32
    %0 = arith.cmpi eq, %arg1, %c0_i32 : i32
    %1 = arith.extui %0 : i1 to i32
    %c0_i32_0 = arith.constant 0 : i32
    %2 = arith.cmpi ne, %1, %c0_i32_0 : i32
    scf.if %2 {
      %cst_9 = arith.constant 0.000000e+00 : f32
      %15 = vector.broadcast %cst_9 : f32 to vector<128x128xf32>
      %c0_10 = arith.constant 0 : index
      %c0_11 = arith.constant 0 : index
      %16 = vector.load %arg6[%c0_10, %c0_11] : memref<128x128xf32, #tpu.memory_space<vmem>>, vector<128x128xf32>
      tpu.vector_store %arg6[%c0_10, %c0_11], %15 {strides = array<i32>} : memref<128x128xf32, #tpu.memory_space<vmem>>, vector<128x128xf32>,
    } else {
    }
    %c128_i32 = arith.constant 128 : i32
    %3 = arith.muli %arg1, %c128_i32 : i32
    %4 = tpu.assume_multiple %3, 128 : i32
    %c0 = arith.constant 0 : index
    %c0_1 = arith.constant 0 : index
    %5 = vector.load %arg6[%c0, %c0_1] : memref<128x128xf32, #tpu.memory_space<vmem>>, vector<128x128xf32>
    %c0_2 = arith.constant 0 : index
    %c0_3 = arith.constant 0 : index
    %6 = vector.load %arg2[%c0_2, %c0_3] : memref<128x128xbf16, #tpu.memory_space<vmem>>, vector<128x128xbf16>
    %7 = arith.index_cast %4 : i32 to index
    %c0_4 = arith.constant 0 : index
    %8 = vector.load %arg3[%7, %c0_4] : memref<128x128xbf16, #tpu.memory_space<vmem>>, vector<128x128xbf16>
    %cst = arith.constant dense<0.000000e+00> : vector<128x128xf32>
    %9 = tpu.matmul %6, %8, %cst {dimension_numbers = #tpu.dot_dimension_numbers<[1], [0], [0], [1], [0, 0, 1, 1], [], []>} : vector<128x128xbf16>, vector<128x128xbf16>, vector<128x128xf32> -> vector<128x128xf32>
    %10 = arith.addf %5, %9 : vector<128x128xf32>
    %c0_5 = arith.constant 0 : index
    %c0_6 = arith.constant 0 : index
    %11 = vector.load %arg6[%c0_5, %c0_6] : memref<128x128xf32, #tpu.memory_space<vmem>>, vector<128x128xf32>
    tpu.vector_store %arg6[%c0_5, %c0_6], %10 {strides = array<i32>} : memref<128x128xf32, #tpu.memory_space<vmem>>, vector<128x128xf32>,
    %c0_i32_7 = arith.constant 0 : i32
    %12 = arith.cmpi eq, %arg1, %c0_i32_7 : i32
    %13 = arith.extui %12 : i1 to i32
    %c0_i32_8 = arith.constant 0 : i32
    %14 = arith.cmpi ne, %13, %c0_i32_8 : i32
    scf.if %14 {
      %c0_9 = arith.constant 0 : index
      %c0_10 = arith.constant 0 : index
      %15 = vector.load %arg6[%c0_9, %c0_10] : memref<128x128xf32, #tpu.memory_space<vmem>>, vector<128x128xf32>
      %c0_11 = arith.constant 0 : index
      %c0_12 = arith.constant 0 : index
      %16 = vector.load %arg4[%c0_11, %c0_12] : memref<1x128xf32, #tpu.memory_space<vmem>>, vector<1x128xf32>
      %17 = vector.broadcast %16 : vector<1x128xf32> to vector<128x128xf32>
      %18 = arith.addf %15, %17 : vector<128x128xf32>
      %cst_13 = arith.constant 0.000000e+00 : f32
      %19 = vector.broadcast %cst_13 : f32 to vector<128x128xf32>
      %20 = arith.maximumf %18, %19 : vector<128x128xf32>
      %21 = arith.truncf %20 : vector<128x128xf32> to vector<128x128xbf16>
      %c0_14 = arith.constant 0 : index
      %c0_15 = arith.constant 0 : index
      %22 = vector.load %arg5[%c0_14, %c0_15] : memref<128x128xbf16, #tpu.memory_space<vmem>>, vector<128x128xbf16>
      tpu.vector_store %arg5[%c0_14, %c0_15], %21 {strides = array<i32>} : memref<128x128xbf16, #tpu.memory_space<vmem>>, vector<128x128xbf16>,
    } else {
    }
    return
  }
  func.func @transform_0(%arg0: i32, %arg1: i32) -> (i32, i32) {
    %c0_i32 = arith.constant 0 : i32
    return %arg0, %arg1 : i32, i32
  }
  func.func @transform_1(%arg0: i32, %arg1: i32) -> (i32, i32) {
    %c0_i32 = arith.constant 0 : i32
    %c0_i32_0 = arith.constant 0 : i32
    %c0_i32_1 = arith.constant 0 : i32
    return %c0_i32, %c0_i32_0 : i32, i32
  }
  func.func @transform_2(%arg0: i32, %arg1: i32) -> (i32, i32) {
    %c0_i32 = arith.constant 0 : i32
    %c0_i32_0 = arith.constant 0 : i32
    %c0_i32_1 = arith.constant 0 : i32
    return %c0_i32, %c0_i32_0 : i32, i32
  }
  func.func @transform_3(%arg0: i32, %arg1: i32) -> (i32, i32) {
    %c0_i32 = arith.constant 0 : i32
    %c0_i32_0 = arith.constant 0 : i32
    return %arg0, %c0_i32 : i32, i32
  }
}

module attributes {stable_mosaic.version = 11 : i64} {
  func.func @_adj_mm_bias_logsoftmax_kernel(%arg0: i32, %arg1: i32, %arg2: memref<128x128xbf16, #tpu.memory_space<vmem>>, %arg3: memref<128x128xbf16, #tpu.memory_space<vmem>>, %arg4: memref<1x128xf32, #tpu.memory_space<vmem>>, %arg5: memref<128x128xf32, #tpu.memory_space<vmem>>) attributes {dimension_semantics = [#tpu.dimension_semantics<parallel>, #tpu.dimension_semantics<arbitrary>], iteration_bounds = array<i64: 1, 1>, scalar_prefetch = 0 : i64, scratch_operands = 0 : i64, tpu.core_type = #tpu.core_type<tc>, window_params = [{transform_indices = @transform_0, window_bounds = array<i64: 128, 128>}, {pipeline_mode = #tpu.pipeline_mode<synchronous>, transform_indices = @transform_1, window_bounds = array<i64: 128, 128>}, {pipeline_mode = #tpu.pipeline_mode<synchronous>, transform_indices = @transform_2, window_bounds = array<i64: 1, 128>}, {transform_indices = @transform_3, window_bounds = array<i64: 128, 128>}]} {
    %c0_i32 = arith.constant 0 : i32
    %0 = arith.cmpi eq, %arg1, %c0_i32 : i32
    %1 = arith.extui %0 : i1 to i32
    %c0_i32_0 = arith.constant 0 : i32
    %2 = arith.cmpi ne, %1, %c0_i32_0 : i32
    scf.if %2 {
      %cst_9 = arith.constant 0.000000e+00 : f32
      %15 = vector.broadcast %cst_9 : f32 to vector<128x128xf32>
      %c0_10 = arith.constant 0 : index
      %c0_11 = arith.constant 0 : index
      %16 = vector.load %arg5[%c0_10, %c0_11] : memref<128x128xf32, #tpu.memory_space<vmem>>, vector<128x128xf32>
      tpu.vector_store %arg5[%c0_10, %c0_11], %15 {strides = array<i32>} : memref<128x128xf32, #tpu.memory_space<vmem>>, vector<128x128xf32>,
    } else {
    }
    %c128_i32 = arith.constant 128 : i32
    %3 = arith.muli %arg1, %c128_i32 : i32
    %4 = tpu.assume_multiple %3, 128 : i32
    %c0 = arith.constant 0 : index
    %c0_1 = arith.constant 0 : index
    %5 = vector.load %arg5[%c0, %c0_1] : memref<128x128xf32, #tpu.memory_space<vmem>>, vector<128x128xf32>
    %c0_2 = arith.constant 0 : index
    %c0_3 = arith.constant 0 : index
    %6 = vector.load %arg2[%c0_2, %c0_3] : memref<128x128xbf16, #tpu.memory_space<vmem>>, vector<128x128xbf16>
    %7 = arith.index_cast %4 : i32 to index
    %c0_4 = arith.constant 0 : index
    %8 = vector.load %arg3[%7, %c0_4] : memref<128x128xbf16, #tpu.memory_space<vmem>>, vector<128x128xbf16>
    %cst = arith.constant dense<0.000000e+00> : vector<128x128xf32>
    %9 = tpu.matmul %6, %8, %cst {dimension_numbers = #tpu.dot_dimension_numbers<[1], [0], [0], [1], [0, 0, 1, 1], [], []>} : vector<128x128xbf16>, vector<128x128xbf16>, vector<128x128xf32> -> vector<128x128xf32>
    %10 = arith.addf %5, %9 : vector<128x128xf32>
    %c0_5 = arith.constant 0 : index
    %c0_6 = arith.constant 0 : index
    %11 = vector.load %arg5[%c0_5, %c0_6] : memref<128x128xf32, #tpu.memory_space<vmem>>, vector<128x128xf32>
    tpu.vector_store %arg5[%c0_5, %c0_6], %10 {strides = array<i32>} : memref<128x128xf32, #tpu.memory_space<vmem>>, vector<128x128xf32>,
    %c0_i32_7 = arith.constant 0 : i32
    %12 = arith.cmpi eq, %arg1, %c0_i32_7 : i32
    %13 = arith.extui %12 : i1 to i32
    %c0_i32_8 = arith.constant 0 : i32
    %14 = arith.cmpi ne, %13, %c0_i32_8 : i32
    scf.if %14 {
      %c0_9 = arith.constant 0 : index
      %c0_10 = arith.constant 0 : index
      %15 = vector.load %arg5[%c0_9, %c0_10] : memref<128x128xf32, #tpu.memory_space<vmem>>, vector<128x128xf32>
      %c0_11 = arith.constant 0 : index
      %c0_12 = arith.constant 0 : index
      %16 = vector.load %arg4[%c0_11, %c0_12] : memref<1x128xf32, #tpu.memory_space<vmem>>, vector<1x128xf32>
      %17 = vector.broadcast %16 : vector<1x128xf32> to vector<128x128xf32>
      %18 = arith.addf %15, %17 : vector<128x128xf32>
      %19 = tpu.iota {dimensions = array<i32: 1>} : vector<128x128xi32>
      %c8_i32 = arith.constant 8 : i32
      %20 = vector.broadcast %c8_i32 : i32 to vector<128x128xi32>
      %21 = arith.cmpi slt, %19, %20 : vector<128x128xi32>
      %cst_13 = arith.constant 0xFF800000 : f32
      %22 = vector.broadcast %cst_13 : f32 to vector<128x128xf32>
      %23 = arith.select %21, %18, %22 : vector<128x128xi1>, vector<128x128xf32>
      %cst_14 = arith.constant dense<0xFF800000> : vector<128xf32>
      %24 = vector.multi_reduction <maximumf>, %23, %cst_14 [1] : vector<128x128xf32> to vector<128xf32>
      %25 = vector.shape_cast %24 : vector<128xf32> to vector<128x1xf32>
      %26 = vector.broadcast %25 : vector<128x1xf32> to vector<128x128xf32>
      %27 = arith.subf %18, %26 : vector<128x128xf32>
      %cst_15 = arith.constant 0xFF800000 : f32
      %28 = vector.broadcast %cst_15 : f32 to vector<128x128xf32>
      %29 = arith.select %21, %27, %28 : vector<128x128xi1>, vector<128x128xf32>
      %30 = math.exp %29 : vector<128x128xf32>
      %cst_16 = arith.constant dense<0.000000e+00> : vector<128xf32>
      %31 = vector.multi_reduction <add>, %30, %cst_16 [1] : vector<128x128xf32> to vector<128xf32>
      %32 = vector.shape_cast %31 : vector<128xf32> to vector<128x1xf32>
      %33 = math.log %32 : vector<128x1xf32>
      %34 = vector.broadcast %25 : vector<128x1xf32> to vector<128x128xf32>
      %35 = arith.subf %18, %34 : vector<128x128xf32>
      %36 = vector.broadcast %33 : vector<128x1xf32> to vector<128x128xf32>
      %37 = arith.subf %35, %36 : vector<128x128xf32>
      %c0_17 = arith.constant 0 : index
      %c0_18 = arith.constant 0 : index
      %38 = vector.load %arg5[%c0_17, %c0_18] : memref<128x128xf32, #tpu.memory_space<vmem>>, vector<128x128xf32>
      tpu.vector_store %arg5[%c0_17, %c0_18], %37 {strides = array<i32>} : memref<128x128xf32, #tpu.memory_space<vmem>>, vector<128x128xf32>,
    } else {
    }
    return
  }
  func.func @transform_0(%arg0: i32, %arg1: i32) -> (i32, i32) {
    %c0_i32 = arith.constant 0 : i32
    return %arg0, %arg1 : i32, i32
  }
  func.func @transform_1(%arg0: i32, %arg1: i32) -> (i32, i32) {
    %c0_i32 = arith.constant 0 : i32
    %c0_i32_0 = arith.constant 0 : i32
    %c0_i32_1 = arith.constant 0 : i32
    return %c0_i32, %c0_i32_0 : i32, i32
  }
  func.func @transform_2(%arg0: i32, %arg1: i32) -> (i32, i32) {
    %c0_i32 = arith.constant 0 : i32
    %c0_i32_0 = arith.constant 0 : i32
    %c0_i32_1 = arith.constant 0 : i32
    return %c0_i32, %c0_i32_0 : i32, i32
  }
  func.func @transform_3(%arg0: i32, %arg1: i32) -> (i32, i32) {
    %c0_i32 = arith.constant 0 : i32
    %c0_i32_0 = arith.constant 0 : i32
    return %arg0, %c0_i32 : i32, i32
  }
}

</mosaic_0001>

<bundles_post_ra>
// kernel: gcn_forward.4
= control target key start
LH: loop header
LB: loop body
LE: loop exit
PB: predicated region body
PF: predicated region fallthrough
CT: control target
= control target key end

     0   :  { %s556_s1 = inlined_call_operand.vmem [shape: bf16[128,128], index: 1, kind: input, shape index: {}]   ;;  %s557_s0 = inlined_call_operand.vmem [shape: bf16[128,128], index: 0, kind: input, shape index: {}]   ;;  %s558_s2 = inlined_call_operand.vmem [shape: bf16[128,128], index: 2, kind: output, shape index: {}]  }
   0x1   :  { %v397_v0 = vld [vmem:[%s556_s1 + $0x38] sm:$0xff]  ;;  %v396_v1 = vld [vmem:[%s556_s1 + $0x30] sm:$0xff]  ;;  %v395_v2 = vld [vmem:[%s556_s1 + $0x28] sm:$0xff] }
   0x2   :  { %180 = vmatpush.bf16.msra.mxu0 %v397_v0  ;;  %445 = vmatpush.bf16.msra.mxu1 %v397_v0  ;;  %v394_v3 = vld [vmem:[%s556_s1 + $0x20] sm:$0xff]  ;;  %v393_v4 = vld [vmem:[%s556_s1 + $0x18] sm:$0xff]  ;;  %v392_v5 = vld [vmem:[%s556_s1 + $0x10] sm:$0xff] }
   0x3   :  { %446 = vmatpush.bf16.msra.mxu2 %v397_v0  ;;  %447 = vmatpush.bf16.msra.mxu3 %v397_v0  ;;  %v391_v6 = vld [vmem:[%s556_s1 + $0x8] sm:$0xff]  ;;  %v390_v7 = vld [vmem:[%s556_s1] sm:$0xff]  ;;  %v384_v9 = vld [vmem:[%s557_s0 + $0x10] sm:$0xff] }
   0x4   :  { %v382_v8 = vld [vmem:[%s557_s0] sm:$0xff]  ;;  %v388_v11 = vld [vmem:[%s557_s0 + $0x30] sm:$0xff]  ;;  %v383_v12 = vld [vmem:[%s557_s0 + $0x8] sm:$0xff] }
   0x5   :  { %v386_v10 = vld [vmem:[%s557_s0 + $0x20] sm:$0xff]  ;;  %v385_v13 = vld [vmem:[%s557_s0 + $0x18] sm:$0xff]  ;;  %v387_v14 = vld [vmem:[%s557_s0 + $0x28] sm:$0xff] }
   0x6   :  { %181 = vmatpush.bf16.msra.mxu0 %v396_v1  ;;  %448 = vmatpush.bf16.msra.mxu1 %v396_v1  ;;  %v389_v15 = vld [vmem:[%s557_s0 + $0x38] sm:$0xff] }
   0x7   :  { %449 = vmatpush.bf16.msra.mxu2 %v396_v1  ;;  %450 = vmatpush.bf16.msra.mxu3 %v396_v1 }
   0xa   :  { %182 = vmatpush.bf16.msra.mxu0 %v395_v2  ;;  %451 = vmatpush.bf16.msra.mxu1 %v395_v2 }
   0xb   :  { %452 = vmatpush.bf16.msra.mxu2 %v395_v2  ;;  %453 = vmatpush.bf16.msra.mxu3 %v395_v2 }
   0xe   :  { %183 = vmatpush.bf16.msra.mxu0 %v394_v3  ;;  %454 = vmatpush.bf16.msra.mxu1 %v394_v3 }
   0xf   :  { %455 = vmatpush.bf16.msra.mxu2 %v394_v3  ;;  %456 = vmatpush.bf16.msra.mxu3 %v394_v3 }
  0x12   :  { %184 = vmatpush.bf16.msra.mxu0 %v393_v4  ;;  %457 = vmatpush.bf16.msra.mxu1 %v393_v4 }
  0x13   :  { %458 = vmatpush.bf16.msra.mxu2 %v393_v4  ;;  %459 = vmatpush.bf16.msra.mxu3 %v393_v4 }
  0x16   :  { %185 = vmatpush.bf16.msra.mxu0 %v392_v5  ;;  %460 = vmatpush.bf16.msra.mxu1 %v392_v5 }
  0x17   :  { %461 = vmatpush.bf16.msra.mxu2 %v392_v5  ;;  %462 = vmatpush.bf16.msra.mxu3 %v392_v5 }
  0x1a   :  { %186 = vmatpush.bf16.msra.mxu0 %v391_v6  ;;  %463 = vmatpush.bf16.msra.mxu1 %v391_v6 }
  0x1b   :  { %464 = vmatpush.bf16.msra.mxu2 %v391_v6  ;;  %465 = vmatpush.bf16.msra.mxu3 %v391_v6 }
  0x1e   :  { %187 = vmatpush.bf16.msra.mxu0 %v390_v7  ;;  %466 = vmatpush.bf16.msra.mxu1 %v390_v7 }
  0x1f   :  { %467 = vmatpush.bf16.msra.mxu2 %v390_v7  ;;  %468 = vmatpush.bf16.msra.mxu3 %v390_v7 }
  0x21   :  { %188 = vmatmul.bf16.vlgmr.msra.gmra.mxu0 %v382_v8  ;;  %198 = vmatmul.bf16.vlgmr.msra.gmra.mxu1 %v384_v9 }
  0x22   :  { %208 = vmatmul.bf16.vlgmr.msra.gmra.mxu2 %v386_v10  ;;  %218 = vmatmul.bf16.vlgmr.msra.gmra.mxu3 %v388_v11 }
  0x31   :  { %193 = vmatmul.bf16.gmra.mxu0 %v383_v12  ;;  %203 = vmatmul.bf16.gmra.mxu1 %v385_v13 }
  0x32   :  { %213 = vmatmul.bf16.gmra.mxu2 %v387_v14  ;;  %223 = vmatmul.bf16.gmra.mxu3 %v389_v15 }
  0x9e   :  { %v189_v16 = vpop.f32.mrf.mxu0  ;;  %v199_v17 = vpop.f32.mrf.mxu1 }
  0xa5   :  { %v209_v18 = vpop.f32.mrf.mxu2  ;;  %v219_v19 = vpop.f32.mrf.mxu3 }
  0xa6   :  { %v191_v20 = vpop.f32.mrf.mxu0  ;;  %v201_v21 = vpop.f32.mrf.mxu1 }
  0xa7   :  { %v401_v22 = vpack.c.bf16 %v191_v20, %v189_v16  ;;  %v411_v23 = vpack.c.bf16 %v201_v21, %v199_v17 }
  0xa9   :  { %402 = vst [vmem:[%s558_s2] sm:$0xff] %v401_v22  }
  0xaa   :  { %439 = vst [vmem:[%s558_s2 + $0x10] sm:$0xff] %v411_v23  }
  0xad   :  { %v211_v24 = vpop.f32.mrf.mxu2  ;;  %v221_v25 = vpop.f32.mrf.mxu3 }
  0xae   :  { %v421_v26 = vpack.c.bf16 %v211_v24, %v209_v18  ;;  %v431_v27 = vpack.c.bf16 %v221_v25, %v219_v19  ;;  %v194_v28 = vpop.f32.mrf.mxu0  ;;  %v204_v29 = vpop.f32.mrf.mxu1 }
  0xb0   :  { %441 = vst [vmem:[%s558_s2 + $0x20] sm:$0xff] %v421_v26  }
  0xb1   :  { %443 = vst [vmem:[%s558_s2 + $0x30] sm:$0xff] %v431_v27  }
  0xb5   :  { %v214_v30 = vpop.f32.mrf.mxu2  ;;  %v224_v31 = vpop.f32.mrf.mxu3 }
  0xb6   :  { %v196_v32 = vpop.f32.mrf.mxu0  ;;  %v206_v33 = vpop.f32.mrf.mxu1 }
  0xb7   :  { %v406_v34 = vpack.c.bf16 %v196_v32, %v194_v28  ;;  %v416_v35 = vpack.c.bf16 %v206_v33, %v204_v29 }
  0xb9   :  { %438 = vst [vmem:[%s558_s2 + $0x8] sm:$0xff] %v406_v34  }
  0xba   :  { %440 = vst [vmem:[%s558_s2 + $0x18] sm:$0xff] %v416_v35  }
  0xbd   :  { %v216_v36 = vpop.f32.mrf.mxu2  ;;  %v226_v37 = vpop.f32.mrf.mxu3 }
  0xbe   :  { %v426_v38 = vpack.c.bf16 %v216_v36, %v214_v30  ;;  %v436_v39 = vpack.c.bf16 %v226_v37, %v224_v31 }
  0xc0   :  { %442 = vst [vmem:[%s558_s2 + $0x28] sm:$0xff] %v426_v38  }
  0xc1   :  { %444 = vst [vmem:[%s558_s2 + $0x38] sm:$0xff] %v436_v39  }

// kernel: gcn_forward.5
= control target key start
LH: loop header
LB: loop body
LE: loop exit
PB: predicated region body
PF: predicated region fallthrough
CT: control target
= control target key end

     0   :  { %s604_s1 = inlined_call_operand.vmem [shape: bf16[128,128], index: 1, kind: input, shape index: {}]   ;;  %s605_s2 = inlined_call_operand.vmem [shape: f32[1,128], index: 2, kind: input, shape index: {}]   ;;  %s606_s0 = inlined_call_operand.vmem [shape: bf16[128,128], index: 0, kind: input, shape index: {}]   ;;  %s607_s3 = inlined_call_operand.vmem [shape: bf16[128,128], index: 3, kind: output, shape index: {}]  }
   0x1   :  { %v436_v0 = vld [vmem:[%s604_s1 + $0x38] sm:$0xff]  ;;  %v435_v1 = vld [vmem:[%s604_s1 + $0x30] sm:$0xff]  ;;  %v434_v2 = vld [vmem:[%s604_s1 + $0x28] sm:$0xff] }
   0x2   :  { %183 = vmatpush.bf16.msra.mxu0 %v436_v0  ;;  %484 = vmatpush.bf16.msra.mxu1 %v436_v0  ;;  %v433_v3 = vld [vmem:[%s604_s1 + $0x20] sm:$0xff]  ;;  %v432_v4 = vld [vmem:[%s604_s1 + $0x18] sm:$0xff]  ;;  %v431_v5 = vld [vmem:[%s604_s1 + $0x10] sm:$0xff] }
   0x3   :  { %485 = vmatpush.bf16.msra.mxu2 %v436_v0  ;;  %486 = vmatpush.bf16.msra.mxu3 %v436_v0  ;;  %v430_v6 = vld [vmem:[%s604_s1 + $0x8] sm:$0xff]  ;;  %v429_v7 = vld [vmem:[%s604_s1] sm:$0xff]  ;;  %v423_v9 = vld [vmem:[%s606_s0 + $0x10] sm:$0xff] }
   0x4   :  { %v421_v8 = vld [vmem:[%s606_s0] sm:$0xff]  ;;  %v427_v11 = vld [vmem:[%s606_s0 + $0x30] sm:$0xff]  ;;  %v422_v12 = vld [vmem:[%s606_s0 + $0x8] sm:$0xff] }
   0x5   :  { %v425_v10 = vld [vmem:[%s606_s0 + $0x20] sm:$0xff]  ;;  %v424_v13 = vld [vmem:[%s606_s0 + $0x18] sm:$0xff]  ;;  %v426_v14 = vld [vmem:[%s606_s0 + $0x28] sm:$0xff] }
   0x6   :  { %184 = vmatpush.bf16.msra.mxu0 %v435_v1  ;;  %487 = vmatpush.bf16.msra.mxu1 %v435_v1  ;;  %v428_v15 = vld [vmem:[%s606_s0 + $0x38] sm:$0xff]  ;;  %v508_v18 = vld [vmem:[%s605_s2] ss:$0 sm:$0xff] }
   0x7   :  { %488 = vmatpush.bf16.msra.mxu2 %v435_v1  ;;  %489 = vmatpush.bf16.msra.mxu3 %v435_v1 }
   0xa   :  { %185 = vmatpush.bf16.msra.mxu0 %v434_v2  ;;  %490 = vmatpush.bf16.msra.mxu1 %v434_v2 }
   0xb   :  { %491 = vmatpush.bf16.msra.mxu2 %v434_v2  ;;  %492 = vmatpush.bf16.msra.mxu3 %v434_v2 }
   0xe   :  { %186 = vmatpush.bf16.msra.mxu0 %v433_v3  ;;  %493 = vmatpush.bf16.msra.mxu1 %v433_v3 }
   0xf   :  { %494 = vmatpush.bf16.msra.mxu2 %v433_v3  ;;  %495 = vmatpush.bf16.msra.mxu3 %v433_v3 }
  0x12   :  { %187 = vmatpush.bf16.msra.mxu0 %v432_v4  ;;  %496 = vmatpush.bf16.msra.mxu1 %v432_v4 }
  0x13   :  { %497 = vmatpush.bf16.msra.mxu2 %v432_v4  ;;  %498 = vmatpush.bf16.msra.mxu3 %v432_v4 }
  0x16   :  { %188 = vmatpush.bf16.msra.mxu0 %v431_v5  ;;  %499 = vmatpush.bf16.msra.mxu1 %v431_v5 }
  0x17   :  { %500 = vmatpush.bf16.msra.mxu2 %v431_v5  ;;  %501 = vmatpush.bf16.msra.mxu3 %v431_v5 }
  0x1a   :  { %189 = vmatpush.bf16.msra.mxu0 %v430_v6  ;;  %502 = vmatpush.bf16.msra.mxu1 %v430_v6 }
  0x1b   :  { %503 = vmatpush.bf16.msra.mxu2 %v430_v6  ;;  %504 = vmatpush.bf16.msra.mxu3 %v430_v6 }
  0x1e   :  { %190 = vmatpush.bf16.msra.mxu0 %v429_v7  ;;  %505 = vmatpush.bf16.msra.mxu1 %v429_v7 }
  0x1f   :  { %506 = vmatpush.bf16.msra.mxu2 %v429_v7  ;;  %507 = vmatpush.bf16.msra.mxu3 %v429_v7 }
  0x21   :  { %191 = vmatmul.bf16.vlgmr.msra.gmra.mxu0 %v421_v8  ;;  %201 = vmatmul.bf16.vlgmr.msra.gmra.mxu1 %v423_v9 }
  0x22   :  { %211 = vmatmul.bf16.vlgmr.msra.gmra.mxu2 %v425_v10  ;;  %221 = vmatmul.bf16.vlgmr.msra.gmra.mxu3 %v427_v11 }
  0x31   :  { %196 = vmatmul.bf16.gmra.mxu0 %v422_v12  ;;  %206 = vmatmul.bf16.gmra.mxu1 %v424_v13 }
  0x32   :  { %216 = vmatmul.bf16.gmra.mxu2 %v426_v14  ;;  %226 = vmatmul.bf16.gmra.mxu3 %v428_v15 }
  0x9e   :  { %v192_v16 = vpop.f32.mrf.mxu0  ;;  %v202_v17 = vpop.f32.mrf.mxu1 }
  0x9f   :  { %v287_v19 = vadd.f32 %v508_v18, %v192_v16  ;;  %v291_v20 = vadd.f32 %v508_v18, %v202_v17 }
  0xa1   :  { %v303_v27 = vmax.f32 %v287_v19, 0.0  ;;  %v307_v28 = vmax.f32 %v291_v20, 0.0 }
  0xa5   :  { %v212_v21 = vpop.f32.mrf.mxu2  ;;  %v222_v22 = vpop.f32.mrf.mxu3 }
  0xa6   :  { %v194_v23 = vpop.f32.mrf.mxu0  ;;  %v204_v24 = vpop.f32.mrf.mxu1  ;;  %v295_v33 = vadd.f32 %v508_v18, %v212_v21  ;;  %v299_v34 = vadd.f32 %v508_v18, %v222_v22 }
  0xa7   :  { %v288_v25 = vadd.f32 %v508_v18, %v194_v23  ;;  %v292_v26 = vadd.f32 %v508_v18, %v204_v24 }
  0xa8   :  { %v311_v41 = vmax.f32 %v295_v33, 0.0  ;;  %v315_v42 = vmax.f32 %v299_v34, 0.0 }
  0xa9   :  { %v304_v29 = vmax.f32 %v288_v25, 0.0  ;;  %v308_v30 = vmax.f32 %v292_v26, 0.0 }
  0xab   :  { %v440_v31 = vpack.c.bf16 %v304_v29, %v303_v27  ;;  %v450_v32 = vpack.c.bf16 %v308_v30, %v307_v28 }
  0xad   :  { %441 = vst [vmem:[%s607_s3] sm:$0xff] %v440_v31   ;;  %v214_v35 = vpop.f32.mrf.mxu2  ;;  %v224_v36 = vpop.f32.mrf.mxu3 }
  0xae   :  { %478 = vst [vmem:[%s607_s3 + $0x10] sm:$0xff] %v450_v32   ;;  %v296_v37 = vadd.f32 %v508_v18, %v214_v35  ;;  %v300_v38 = vadd.f32 %v508_v18, %v224_v36  ;;  %v197_v39 = vpop.f32.mrf.mxu0  ;;  %v207_v40 = vpop.f32.mrf.mxu1 }
  0xaf   :  { %v289_v47 = vadd.f32 %v508_v18, %v197_v39  ;;  %v293_v48 = vadd.f32 %v508_v18, %v207_v40 }
  0xb0   :  { %v312_v43 = vmax.f32 %v296_v37, 0.0  ;;  %v316_v44 = vmax.f32 %v300_v38, 0.0 }
  0xb1   :  { %v305_v55 = vmax.f32 %v289_v47, 0.0  ;;  %v309_v56 = vmax.f32 %v293_v48, 0.0 }
  0xb2   :  { %v460_v45 = vpack.c.bf16 %v312_v43, %v311_v41  ;;  %v470_v46 = vpack.c.bf16 %v316_v44, %v315_v42 }
  0xb4   :  { %480 = vst [vmem:[%s607_s3 + $0x20] sm:$0xff] %v460_v45  }
  0xb5   :  { %482 = vst [vmem:[%s607_s3 + $0x30] sm:$0xff] %v470_v46   ;;  %v217_v49 = vpop.f32.mrf.mxu2  ;;  %v227_v50 = vpop.f32.mrf.mxu3 }
  0xb6   :  { %v199_v51 = vpop.f32.mrf.mxu0  ;;  %v209_v52 = vpop.f32.mrf.mxu1  ;;  %v297_v61 = vadd.f32 %v508_v18, %v217_v49  ;;  %v301_v62 = vadd.f32 %v508_v18, %v227_v50 }
  0xb7   :  { %v290_v53 = vadd.f32 %v508_v18, %v199_v51  ;;  %v294_v54 = vadd.f32 %v508_v18, %v209_v52 }
  0xb8   :  { %v313_v3 = vmax.f32 %v297_v61, 0.0  ;;  %v317_v4 = vmax.f32 %v301_v62, 0.0 }
  0xb9   :  { %v306_v57 = vmax.f32 %v290_v53, 0.0  ;;  %v310_v58 = vmax.f32 %v294_v54, 0.0 }
  0xbb   :  { %v445_v59 = vpack.c.bf16 %v306_v57, %v305_v55  ;;  %v455_v60 = vpack.c.bf16 %v310_v58, %v309_v56 }
  0xbd   :  { %477 = vst [vmem:[%s607_s3 + $0x8] sm:$0xff] %v445_v59   ;;  %v219_v63 = vpop.f32.mrf.mxu2  ;;  %v229_v0 = vpop.f32.mrf.mxu3 }
  0xbe   :  { %479 = vst [vmem:[%s607_s3 + $0x18] sm:$0xff] %v455_v60   ;;  %v298_v1 = vadd.f32 %v508_v18, %v219_v63  ;;  %v302_v2 = vadd.f32 %v508_v18, %v229_v0 }
  0xc0   :  { %v314_v5 = vmax.f32 %v298_v1, 0.0  ;;  %v318_v6 = vmax.f32 %v302_v2, 0.0 }
  0xc2   :  { %v465_v7 = vpack.c.bf16 %v314_v5, %v313_v3  ;;  %v475_v8 = vpack.c.bf16 %v318_v6, %v317_v4 }
  0xc4   :  { %481 = vst [vmem:[%s607_s3 + $0x28] sm:$0xff] %v465_v7  }
  0xc5   :  { %483 = vst [vmem:[%s607_s3 + $0x38] sm:$0xff] %v475_v8  }

// kernel: gcn_forward.7
= control target key start
LH: loop header
LB: loop body
LE: loop exit
PB: predicated region body
PF: predicated region fallthrough
CT: control target
= control target key end

     0   :  { %v303_v16 = vlaneseq  ;;  %s1022_s1 = inlined_call_operand.vmem [shape: bf16[128,128], index: 1, kind: input, shape index: {}]   ;;  %s1023_s0 = inlined_call_operand.vmem [shape: bf16[128,128], index: 0, kind: input, shape index: {}]   ;;  %s1024_s2 = inlined_call_operand.vmem [shape: f32[1,128], index: 2, kind: input, shape index: {}]   ;;  %s1025_s3 = inlined_call_operand.vmem [shape: f32[128,128], index: 3, kind: output, shape index: {}]  }
   0x1   :  { %v599_v0 = vld [vmem:[%s1022_s1 + $0x38] sm:$0xff]  ;;  %v598_v1 = vld [vmem:[%s1022_s1 + $0x30] sm:$0xff]  ;;  %v597_v2 = vld [vmem:[%s1022_s1 + $0x28] sm:$0xff] }
   0x2   :  { %183 = vmatpush.bf16.msra.mxu0 %v599_v0  ;;  %600 = vmatpush.bf16.msra.mxu1 %v599_v0  ;;  %v596_v3 = vld [vmem:[%s1022_s1 + $0x20] sm:$0xff]  ;;  %v595_v4 = vld [vmem:[%s1022_s1 + $0x18] sm:$0xff]  ;;  %v594_v5 = vld [vmem:[%s1022_s1 + $0x10] sm:$0xff]  ;;  %v758_v17 = vand.u32 127, %v303_v16 }
   0x3   :  { %601 = vmatpush.bf16.msra.mxu2 %v599_v0  ;;  %602 = vmatpush.bf16.msra.mxu3 %v599_v0  ;;  %v593_v6 = vld [vmem:[%s1022_s1 + $0x8] sm:$0xff]  ;;  %v592_v7 = vld [vmem:[%s1022_s1] sm:$0xff]  ;;  %v586_v9 = vld [vmem:[%s1023_s0 + $0x10] sm:$0xff] }
   0x4   :  { %v584_v8 = vld [vmem:[%s1023_s0] sm:$0xff]  ;;  %v590_v11 = vld [vmem:[%s1023_s0 + $0x30] sm:$0xff]  ;;  %v585_v12 = vld [vmem:[%s1023_s0 + $0x8] sm:$0xff]  ;;  %vm305_vm0 = vcmp.lt.s32.totalorder %v758_v17, 8 }
   0x5   :  { %v588_v10 = vld [vmem:[%s1023_s0 + $0x20] sm:$0xff]  ;;  %v587_v13 = vld [vmem:[%s1023_s0 + $0x18] sm:$0xff]  ;;  %v589_v14 = vld [vmem:[%s1023_s0 + $0x28] sm:$0xff] }
   0x6   :  { %184 = vmatpush.bf16.msra.mxu0 %v598_v1  ;;  %603 = vmatpush.bf16.msra.mxu1 %v598_v1  ;;  %v591_v15 = vld [vmem:[%s1023_s0 + $0x38] sm:$0xff]  ;;  %v763_v18 = vld [vmem:[%s1024_s2] ss:$0 sm:$0xff] }
   0x7   :  { %604 = vmatpush.bf16.msra.mxu2 %v598_v1  ;;  %605 = vmatpush.bf16.msra.mxu3 %v598_v1 }
   0xa   :  { %185 = vmatpush.bf16.msra.mxu0 %v597_v2  ;;  %606 = vmatpush.bf16.msra.mxu1 %v597_v2 }
   0xb   :  { %607 = vmatpush.bf16.msra.mxu2 %v597_v2  ;;  %608 = vmatpush.bf16.msra.mxu3 %v597_v2 }
   0xe   :  { %186 = vmatpush.bf16.msra.mxu0 %v596_v3  ;;  %609 = vmatpush.bf16.msra.mxu1 %v596_v3 }
   0xf   :  { %610 = vmatpush.bf16.msra.mxu2 %v596_v3  ;;  %611 = vmatpush.bf16.msra.mxu3 %v596_v3 }
  0x12   :  { %187 = vmatpush.bf16.msra.mxu0 %v595_v4  ;;  %612 = vmatpush.bf16.msra.mxu1 %v595_v4 }
  0x13   :  { %613 = vmatpush.bf16.msra.mxu2 %v595_v4  ;;  %614 = vmatpush.bf16.msra.mxu3 %v595_v4 }
  0x16   :  { %188 = vmatpush.bf16.msra.mxu0 %v594_v5  ;;  %615 = vmatpush.bf16.msra.mxu1 %v594_v5 }
  0x17   :  { %616 = vmatpush.bf16.msra.mxu2 %v594_v5  ;;  %617 = vmatpush.bf16.msra.mxu3 %v594_v5 }
  0x1a   :  { %189 = vmatpush.bf16.msra.mxu0 %v593_v6  ;;  %618 = vmatpush.bf16.msra.mxu1 %v593_v6 }
  0x1b   :  { %619 = vmatpush.bf16.msra.mxu2 %v593_v6  ;;  %620 = vmatpush.bf16.msra.mxu3 %v593_v6 }
  0x1e   :  { %190 = vmatpush.bf16.msra.mxu0 %v592_v7  ;;  %621 = vmatpush.bf16.msra.mxu1 %v592_v7 }
  0x1f   :  { %622 = vmatpush.bf16.msra.mxu2 %v592_v7  ;;  %623 = vmatpush.bf16.msra.mxu3 %v592_v7 }
  0x21   :  { %191 = vmatmul.bf16.vlgmr.msra.gmra.mxu0 %v584_v8  ;;  %201 = vmatmul.bf16.vlgmr.msra.gmra.mxu1 %v586_v9 }
  0x22   :  { %211 = vmatmul.bf16.vlgmr.msra.gmra.mxu2 %v588_v10  ;;  %221 = vmatmul.bf16.vlgmr.msra.gmra.mxu3 %v590_v11 }
  0x31   :  { %196 = vmatmul.bf16.gmra.mxu0 %v585_v12  ;;  %206 = vmatmul.bf16.gmra.mxu1 %v587_v13 }
  0x32   :  { %216 = vmatmul.bf16.gmra.mxu2 %v589_v14  ;;  %226 = vmatmul.bf16.gmra.mxu3 %v591_v15 }
  0x9e   :  { %v192_v19 = vpop.f32.mrf.mxu0  ;;  %v202_v20 = vpop.f32.mrf.mxu1 }
  0x9f   :  { %v767_v21 = vadd.f32 %v763_v18, %v202_v20  ;;  %v770_v22 = vadd.f32 %v763_v18, %v192_v19 }
  0xa1   :  { %v310_v23 = vsel %vm305_vm0, %v767_v21, -inf  ;;  %v306_v24 = vsel %vm305_vm0, %v770_v22, -inf }
  0xa2   :  { %330 = vmax.xlane.f32.xlu2 %v310_v23  ;;  %322 = vmax.xlane.f32.xlu0 %v306_v24 }
  0xa5   :  { %v212_v25 = vpop.f32.mrf.mxu2  ;;  %v222_v26 = vpop.f32.mrf.mxu3 }
  0xa6   :  { %v194_v27 = vpop.f32.mrf.mxu0  ;;  %v204_v28 = vpop.f32.mrf.mxu1  ;;  %v779_v29 = vadd.f32 %v763_v18, %v212_v25  ;;  %v782_v30 = vadd.f32 %v763_v18, %v222_v26 }
  0xa7   :  { %v791_v36 = vadd.f32 %v763_v18, %v204_v28  ;;  %v794_v37 = vadd.f32 %v763_v18, %v194_v27 }
  0xa8   :  { %v314_v31 = vsel %vm305_vm0, %v779_v29, -inf  ;;  %v318_v32 = vsel %vm305_vm0, %v782_v30, -inf }
  0xa9   :  { %v311_v39 = vsel %vm305_vm0, %v791_v36, -inf  ;;  %v307_v40 = vsel %vm305_vm0, %v794_v37, -inf }
  0xaa   :  { %338 = vmax.xlane.f32.xlu2 %v314_v31  ;;  %346 = vmax.xlane.f32.xlu0 %v318_v32 }
  0xad   :  { %v214_v33 = vpop.f32.mrf.mxu2  ;;  %v224_v34 = vpop.f32.mrf.mxu3 }
  0xae   :  { %v197_v35 = vpop.f32.mrf.mxu0  ;;  %v207_v44 = vpop.f32.mrf.mxu1  ;;  %v809_v45 = vadd.f32 %v763_v18, %v214_v33  ;;  %v857_v1 = vadd.f32 %v763_v18, %v224_v34 }
  0xaf   :  { %v797_v38 = vadd.f32 %v763_v18, %v197_v35  ;;  %v821_v51 = vadd.f32 %v763_v18, %v207_v44 }
  0xb0   :  { %v315_v49 = vsel %vm305_vm0, %v809_v45, -inf  ;;  %v319_v2 = vsel %vm305_vm0, %v857_v1, -inf }
  0xb1   :  { %v308_v41 = vsel %vm305_vm0, %v797_v38, -inf  ;;  %v312_v56 = vsel %vm305_vm0, %v821_v51, -inf }
  0xb2   :  { %332 = vmax.xlane.f32.xlu2 %v311_v39  ;;  %324 = vmax.xlane.f32.xlu0 %v307_v40 }
  0xb3   :  { %326 = vmax.xlane.f32.xlu1 %v308_v41 }
  0xb5   :  { %v217_v42 = vpop.f32.mrf.mxu2  ;;  %v227_v43 = vpop.f32.mrf.mxu3 }
  0xb6   :  { %v812_v46 = vadd.f32 %v763_v18, %v217_v42  ;;  %v199_v47 = vpop.f32.mrf.mxu0  ;;  %v209_v55 = vpop.f32.mrf.mxu1  ;;  %v839_v59 = vadd.f32 %v763_v18, %v227_v43 }
  0xb7   :  { %v827_v54 = vadd.f32 %v763_v18, %v199_v47  ;;  %v848_v62 = vadd.f32 %v763_v18, %v209_v55 }
  0xb8   :  { %v316_v48 = vsel %vm305_vm0, %v812_v46, -inf  ;;  %v320_v61 = vsel %vm305_vm0, %v839_v59, -inf }
  0xb9   :  { %v309_v58 = vsel %vm305_vm0, %v827_v54, -inf  ;;  %v313_v0 = vsel %vm305_vm0, %v848_v62, -inf }
  0xba   :  { %340 = vmax.xlane.f32.xlu0 %v315_v49 }
  0xbb   :  { %342 = vmax.xlane.f32.xlu1 %v316_v48 }
  0xbd   :  { %v219_v50 = vpop.f32.mrf.mxu2  ;;  %v229_v52 = vpop.f32.mrf.mxu3 }
  0xbe   :  { %v824_v53 = vadd.f32 %v763_v18, %v219_v50  ;;  %v842_v60 = vadd.f32 %v763_v18, %v229_v52 }
  0xc0   :  { %v317_v57 = vsel %vm305_vm0, %v824_v53, -inf  ;;  %v321_v63 = vsel %vm305_vm0, %v842_v60, -inf }
  0xc1   :  { %344 = vmax.xlane.f32.xlu2 %v317_v57 }
  0xc2   :  { %334 = vmax.xlane.f32.xlu0 %v312_v56 }
  0xc3   :  { %328 = vmax.xlane.f32.xlu1 %v309_v58 }
  0xc9   :  { %350 = vmax.xlane.f32.xlu2 %v320_v61 }
  0xca   :  { %352 = vmax.xlane.f32.xlu0 %v321_v63 }
  0xcb   :  { %336 = vmax.xlane.f32.xlu1 %v313_v0 }
  0xd3   :  { %348 = vmax.xlane.f32.xlu1 %v319_v2 }
 0x115   :  { %v331_v3 = vpop.xlane.xlu2 %330  ;;  %v323_v4 = vpop.xlane.xlu0 %322 }
 0x116   :  { %v863_v5 = vsub.f32 %v767_v21, %v331_v3  ;;  %v866_v6 = vsub.f32 %v770_v22, %v323_v4 }
 0x118   :  { %v374_v7 = vsel %vm305_vm0, %v863_v5, -inf  ;;  %v370_v8 = vsel %vm305_vm0, %v866_v6, -inf }
 0x119   :  { %v394_v9 = vmul.f32 1.442695, %v374_v7  ;;  %v386_v10 = vmul.f32 1.442695, %v370_v8 }
 0x11b   :  { %626 = vpow2.f32 %v394_v9 }
 0x11c   :  { %628 = vpow2.f32 %v386_v10 }
 0x11d   :  { %v339_v11 = vpop.xlane.xlu2 %338  ;;  %v347_v12 = vpop.xlane.xlu0 %346 }
 0x11e   :  { %v875_v13 = vsub.f32 %v779_v29, %v339_v11  ;;  %v878_v14 = vsub.f32 %v782_v30, %v347_v12 }
 0x120   :  { %v378_v15 = vsel %vm305_vm0, %v875_v13, -inf  ;;  %v382_v16 = vsel %vm305_vm0, %v878_v14, -inf }
 0x121   :  { %v627_v18 = vpop.eup %626  ;;  %v402_v19 = vmul.f32 1.442695, %v378_v15  ;;  %v410_v20 = vmul.f32 1.442695, %v382_v16 }
 0x122   :  { %v629_v21 = vpop.eup %628  ;;  %426 = vadd.xlane.f32.xlu2 %v627_v18 }
 0x123   :  { %630 = vpow2.f32 %v402_v19  ;;  %418 = vadd.xlane.f32.xlu1 %v629_v21 }
 0x124   :  { %632 = vpow2.f32 %v410_v20 }
 0x125   :  { %v333_v22 = vpop.xlane.xlu2 %332  ;;  %v325_v23 = vpop.xlane.xlu0 %324 }
 0x126   :  { %v887_v24 = vsub.f32 %v791_v36, %v333_v22  ;;  %v890_v25 = vsub.f32 %v794_v37, %v325_v23  ;;  %v327_v26 = vpop.xlane.xlu1 %326 }
 0x127   :  { %v893_v27 = vsub.f32 %v797_v38, %v327_v26 }
 0x128   :  { %v375_v28 = vsel %vm305_vm0, %v887_v24, -inf  ;;  %v371_v29 = vsel %vm305_vm0, %v890_v25, -inf }
 0x129   :  { %v631_v30 = vpop.eup %630  ;;  %v396_v31 = vmul.f32 1.442695, %v375_v28  ;;  %v388_v32 = vmul.f32 1.442695, %v371_v29  ;;  %v372_v34 = vsel %vm305_vm0, %v893_v27, -inf }
 0x12a   :  { %v633_v33 = vpop.eup %632  ;;  %434 = vadd.xlane.f32.xlu0 %v631_v30  ;;  %v390_v36 = vmul.f32 1.442695, %v372_v34 }
 0x12b   :  { %634 = vpow2.f32 %v396_v31  ;;  %442 = vadd.xlane.f32.xlu1 %v633_v33 }
 0x12c   :  { %636 = vpow2.f32 %v388_v32 }
 0x12d   :  { %v341_v35 = vpop.xlane.xlu0 %340  ;;  %638 = vpow2.f32 %v390_v36 }
 0x12e   :  { %v905_v37 = vsub.f32 %v809_v45, %v341_v35  ;;  %v343_v38 = vpop.xlane.xlu1 %342 }
 0x12f   :  { %v908_v39 = vsub.f32 %v812_v46, %v343_v38 }
 0x130   :  { %v379_v40 = vsel %vm305_vm0, %v905_v37, -inf }
 0x131   :  { %v635_v41 = vpop.eup %634  ;;  %v404_v42 = vmul.f32 1.442695, %v379_v40  ;;  %v380_v43 = vsel %vm305_vm0, %v908_v39, -inf }
 0x132   :  { %v637_v44 = vpop.eup %636  ;;  %v406_v47 = vmul.f32 1.442695, %v380_v43  ;;  %428 = vadd.xlane.f32.xlu0 %v635_v41 }
 0x133   :  { %640 = vpow2.f32 %v404_v42  ;;  %420 = vadd.xlane.f32.xlu2 %v637_v44  ;;  %v639_v56 = vpop.eup %638 }
 0x134   :  { %642 = vpow2.f32 %v406_v47  ;;  %v345_v45 = vpop.xlane.xlu2 %344 }
 0x135   :  { %v917_v46 = vsub.f32 %v824_v53, %v345_v45  ;;  %v335_v48 = vpop.xlane.xlu0 %334 }
 0x136   :  { %v920_v49 = vsub.f32 %v821_v51, %v335_v48  ;;  %v329_v50 = vpop.xlane.xlu1 %328 }
 0x137   :  { %v381_v52 = vsel %vm305_vm0, %v917_v46, -inf  ;;  %v926_v55 = vsub.f32 %v827_v54, %v329_v50 }
 0x138   :  { %v408_v57 = vmul.f32 1.442695, %v381_v52  ;;  %v376_v58 = vsel %vm305_vm0, %v920_v49, -inf }
 0x139   :  { %v641_v53 = vpop.eup %640  ;;  %v398_v61 = vmul.f32 1.442695, %v376_v58  ;;  %v373_v51 = vsel %vm305_vm0, %v926_v55, -inf }
 0x13a   :  { %v643_v63 = vpop.eup %642  ;;  %644 = vpow2.f32 %v408_v57  ;;  %422 = vadd.xlane.f32.xlu0 %v639_v56  ;;  %436 = vadd.xlane.f32.xlu1 %v641_v53  ;;  %v392_v3 = vmul.f32 1.442695, %v373_v51 }
 0x13b   :  { %646 = vpow2.f32 %v398_v61  ;;  %438 = vadd.xlane.f32.xlu2 %v643_v63 }
 0x13c   :  { %v351_v54 = vpop.xlane.xlu2 %350  ;;  %648 = vpow2.f32 %v392_v3 }
 0x13d   :  { %v935_v0 = vsub.f32 %v839_v59, %v351_v54  ;;  %v353_v2 = vpop.xlane.xlu0 %352 }
 0x13e   :  { %v337_v4 = vpop.xlane.xlu1 %336  ;;  %v944_v11 = vsub.f32 %v842_v60, %v353_v2 }
 0x13f   :  { %v384_v7 = vsel %vm305_vm0, %v935_v0, -inf  ;;  %v941_v8 = vsub.f32 %v848_v62, %v337_v4 }
 0x140   :  { %v645_v9 = vpop.eup %644  ;;  %v414_v10 = vmul.f32 1.442695, %v384_v7  ;;  %v385_v62 = vsel %vm305_vm0, %v944_v11, -inf }
 0x141   :  { %v647_v12 = vpop.eup %646  ;;  %v377_v59 = vsel %vm305_vm0, %v941_v8, -inf  ;;  %v416_v18 = vmul.f32 1.442695, %v385_v62 }
 0x142   :  { %v400_v15 = vmul.f32 1.442695, %v377_v59  ;;  %440 = vadd.xlane.f32.xlu0 %v645_v9  ;;  %430 = vadd.xlane.f32.xlu1 %v647_v12  ;;  %650 = vpow2.f32 %v414_v10  ;;  %v649_v19 = vpop.eup %648 }
 0x144   :  { %652 = vpow2.f32 %v400_v15 }
 0x145   :  { %654 = vpow2.f32 %v416_v18 }
 0x146   :  { %v349_v16 = vpop.xlane.xlu1 %348 }
 0x147   :  { %v953_v60 = vsub.f32 %v857_v1, %v349_v16 }
 0x148   :  { %v651_v20 = vpop.eup %650 }
 0x149   :  { %v383_v21 = vsel %vm305_vm0, %v953_v60, -inf }
 0x14a   :  { %v653_v22 = vpop.eup %652  ;;  %v412_v23 = vmul.f32 1.442695, %v383_v21  ;;  %446 = vadd.xlane.f32.xlu0 %v651_v20  ;;  %424 = vadd.xlane.f32.xlu1 %v649_v19 }
 0x14b   :  { %432 = vadd.xlane.f32.xlu2 %v653_v22  ;;  %v655_v26 = vpop.eup %654 }
 0x14c   :  { %656 = vpow2.f32 %v412_v23 }
 0x152   :  { %v657_v28 = vpop.eup %656  ;;  %448 = vadd.xlane.f32.xlu1 %v655_v26 }
 0x153   :  { %444 = vadd.xlane.f32.xlu2 %v657_v28 }
 0x195   :  { %v427_v29 = vpop.xlane.xlu2 %426 }
 0x196   :  { %658 = vlog2.f32 %v427_v29  ;;  %v419_v1 = vpop.xlane.xlu1 %418 }
 0x197   :  { %660 = vlog2.f32 %v419_v1 }
 0x19c   :  { %v659_v30 = vpop.eup %658 }
 0x19d   :  { %v661_v31 = vpop.eup %660  ;;  %v459_v32 = vmul.f32 0.6931472, %v659_v30  ;;  %v435_v17 = vpop.xlane.xlu0 %434 }
 0x19e   :  { %v451_v33 = vmul.f32 0.6931472, %v661_v31  ;;  %662 = vlog2.f32 %v435_v17  ;;  %v443_v34 = vpop.xlane.xlu1 %442 }
 0x19f   :  { %v486_v35 = vsub.f32 %v863_v5, %v459_v32  ;;  %664 = vlog2.f32 %v443_v34 }
 0x1a0   :  { %v482_v36 = vsub.f32 %v866_v6, %v451_v33 }
 0x1a1   :  { %502 = vst [vmem:[%s1025_s3 + $0x20] sm:$0xff] %v486_v35 }
 0x1a2   :  { %498 = vst [vmem:[%s1025_s3] sm:$0xff] %v482_v36 }
 0x1a4   :  { %v663_v38 = vpop.eup %662 }
 0x1a5   :  { %v665_v40 = vpop.eup %664  ;;  %v467_v41 = vmul.f32 0.6931472, %v663_v38  ;;  %v429_v42 = vpop.xlane.xlu0 %428 }
 0x1a6   :  { %v475_v43 = vmul.f32 0.6931472, %v665_v40  ;;  %v421_v44 = vpop.xlane.xlu2 %420  ;;  %666 = vlog2.f32 %v429_v42 }
 0x1a7   :  { %v490_v5 = vsub.f32 %v875_v13, %v467_v41  ;;  %668 = vlog2.f32 %v421_v44 }
 0x1a8   :  { %v494_v6 = vsub.f32 %v878_v14, %v475_v43 }
 0x1a9   :  { %506 = vst [vmem:[%s1025_s3 + $0x40] sm:$0xff] %v490_v5 }
 0x1aa   :  { %510 = vst [vmem:[%s1025_s3 + $0x60] sm:$0xff] %v494_v6 }
 0x1ac   :  { %v667_v47 = vpop.eup %666 }
 0x1ad   :  { %v669_v45 = vpop.eup %668  ;;  %v461_v48 = vmul.f32 0.6931472, %v667_v47  ;;  %v423_v50 = vpop.xlane.xlu0 %422 }
 0x1ae   :  { %v437_v52 = vpop.xlane.xlu1 %436  ;;  %v453_v56 = vmul.f32 0.6931472, %v669_v45  ;;  %670 = vlog2.f32 %v423_v50  ;;  %v439_v57 = vpop.xlane.xlu2 %438 }
 0x1af   :  { %v487_v13 = vsub.f32 %v887_v24, %v461_v48  ;;  %672 = vlog2.f32 %v439_v57 }
 0x1b0   :  { %v483_v14 = vsub.f32 %v890_v25, %v453_v56  ;;  %674 = vlog2.f32 %v437_v52 }
 0x1b1   :  { %503 = vst [vmem:[%s1025_s3 + $0x28] sm:$0xff] %v487_v13 }
 0x1b2   :  { %499 = vst [vmem:[%s1025_s3 + $0x8] sm:$0xff] %v483_v14 }
 0x1b4   :  { %v671_v58 = vpop.eup %670 }
 0x1b5   :  { %v673_v53 = vpop.eup %672  ;;  %v455_v61 = vmul.f32 0.6931472, %v671_v58  ;;  %v441_v63 = vpop.xlane.xlu0 %440 }
 0x1b6   :  { %v431_v51 = vpop.xlane.xlu1 %430  ;;  %v675_v54 = vpop.eup %674  ;;  %v471_v2 = vmul.f32 0.6931472, %v673_v53  ;;  %676 = vlog2.f32 %v441_v63 }
 0x1b7   :  { %v484_v24 = vsub.f32 %v893_v27, %v455_v61  ;;  %v469_v25 = vmul.f32 0.6931472, %v675_v54  ;;  %678 = vlog2.f32 %v431_v51 }
 0x1b8   :  { %v492_v3 = vsub.f32 %v908_v39, %v471_v2 }
 0x1b9   :  { %500 = vst [vmem:[%s1025_s3 + $0x10] sm:$0xff] %v484_v24  ;;  %v491_v4 = vsub.f32 %v905_v37, %v469_v25 }
 0x1ba   :  { %508 = vst [vmem:[%s1025_s3 + $0x50] sm:$0xff] %v492_v3 }
 0x1bb   :  { %507 = vst [vmem:[%s1025_s3 + $0x48] sm:$0xff] %v491_v4 }
 0x1bc   :  { %v677_v7 = vpop.eup %676 }
 0x1bd   :  { %v679_v27 = vpop.eup %678  ;;  %v473_v9 = vmul.f32 0.6931472, %v677_v7  ;;  %v447_v10 = vpop.xlane.xlu0 %446 }
 0x1be   :  { %v425_v12 = vpop.xlane.xlu1 %424  ;;  %v463_v39 = vmul.f32 0.6931472, %v679_v27  ;;  %680 = vlog2.f32 %v447_v10  ;;  %v433_v59 = vpop.xlane.xlu2 %432 }
 0x1bf   :  { %v493_v15 = vsub.f32 %v917_v46, %v473_v9  ;;  %682 = vlog2.f32 %v433_v59 }
 0x1c0   :  { %v488_v37 = vsub.f32 %v920_v49, %v463_v39  ;;  %684 = vlog2.f32 %v425_v12 }
 0x1c1   :  { %509 = vst [vmem:[%s1025_s3 + $0x58] sm:$0xff] %v493_v15 }
 0x1c2   :  { %504 = vst [vmem:[%s1025_s3 + $0x30] sm:$0xff] %v488_v37 }
 0x1c4   :  { %v681_v62 = vpop.eup %680 }
 0x1c5   :  { %v683_v16 = vpop.eup %682  ;;  %v479_v18 = vmul.f32 0.6931472, %v681_v62 }
 0x1c6   :  { %v449_v19 = vpop.xlane.xlu1 %448  ;;  %v685_v20 = vpop.eup %684  ;;  %v465_v21 = vmul.f32 0.6931472, %v683_v16 }
 0x1c7   :  { %v445_v22 = vpop.xlane.xlu2 %444  ;;  %686 = vlog2.f32 %v449_v19  ;;  %v496_v46 = vsub.f32 %v935_v0, %v479_v18  ;;  %v457_v49 = vmul.f32 0.6931472, %v685_v20 }
 0x1c8   :  { %688 = vlog2.f32 %v445_v22  ;;  %v489_v23 = vsub.f32 %v941_v8, %v465_v21 }
 0x1c9   :  { %512 = vst [vmem:[%s1025_s3 + $0x70] sm:$0xff] %v496_v46  ;;  %v485_v26 = vsub.f32 %v926_v55, %v457_v49 }
 0x1ca   :  { %505 = vst [vmem:[%s1025_s3 + $0x38] sm:$0xff] %v489_v23 }
 0x1cb   :  { %501 = vst [vmem:[%s1025_s3 + $0x18] sm:$0xff] %v485_v26 }
 0x1cd   :  { %v687_v28 = vpop.eup %686 }
 0x1ce   :  { %v689_v0 = vpop.eup %688  ;;  %v481_v29 = vmul.f32 0.6931472, %v687_v28 }
 0x1cf   :  { %v477_v1 = vmul.f32 0.6931472, %v689_v0 }
 0x1d0   :  { %v497_v8 = vsub.f32 %v944_v11, %v481_v29 }
 0x1d1   :  { %v495_v30 = vsub.f32 %v953_v60, %v477_v1 }
 0x1d2   :  { %513 = vst [vmem:[%s1025_s3 + $0x78] sm:$0xff] %v497_v8 }
 0x1d3   :  { %511 = vst [vmem:[%s1025_s3 + $0x68] sm:$0xff] %v495_v30 }

</bundles_post_ra>
